<compile_context>
chip_gen: v5e
topology: v5e:2x2
jax: 0.10.0
libtpu: 0.0.40
codegen_flags: <defaults>
</compile_context>

<pallas_src>
import functools

import jax
import jax.numpy as jnp
from jax.experimental import pallas as pl
from jax.experimental.pallas import tpu as pltpu


def autorec_kernel(x_ref, w1_ref, b1_ref, w2_ref, b2_ref, o_ref):
    # encoder: (TM, U) @ (U, L) -> (TM, L); bf16 MXU operands, f32 accumulation
    h = jnp.dot(x_ref[...].astype(jnp.bfloat16), w1_ref[...],
                preferred_element_type=jnp.float32)
    # bias + sigmoid in f32 (VPU add, EUP exp/recip)
    h = jax.nn.sigmoid(h + b1_ref[...])
    # dropout: identity at inference
    # decoder: (TM, L) @ (L, U) -> (TM, U)
    out = jnp.dot(h.astype(jnp.bfloat16), w2_ref[...],
                  preferred_element_type=jnp.float32)
    o_ref[...] = (out + b2_ref[...]).astype(o_ref.dtype)


def prepare_params(w_enc, b_enc, w_dec, b_dec):
    """One-time weight prep, hoisted out of the per-call path:
    pre-transpose to row-major matmul operands and cast weights to bf16."""
    w1 = w_enc.T.astype(jnp.bfloat16)              # (U, L)
    w2 = w_dec.T.astype(jnp.bfloat16)              # (L, U)
    b1 = b_enc.reshape(1, -1).astype(jnp.float32)  # (1, L)
    b2 = b_dec.reshape(1, -1).astype(jnp.float32)  # (1, U)
    return w1, b1, w2, b2


@functools.partial(jax.jit, static_argnames=("block_m",))
def autorec_forward(x, w1, b1, w2, b2, block_m=128):
    """x: (B, num_user) f32; w1: (U, L) bf16; w2: (L, U) bf16; b1/b2 f32 (1, -1)."""
    B, U = x.shape
    L = w1.shape[1]

    # For tiny batches, shrink the M tile to the 8-aligned batch (sublane min)
    # instead of padding all the way to block_m.
    tm = min(block_m, pl.cdiv(B, 8) * 8)
    B_pad = pl.cdiv(B, tm) * tm
    if B_pad != B:
        x = jnp.pad(x, ((0, B_pad - B), (0, 0)))

    grid = (B_pad // tm,)

    flops = 4 * B_pad * U * L  # two matmuls, 2*M*K*N each
    bytes_accessed = (B_pad * U * x.dtype.itemsize          # x in
                      + U * L * 2 + L * U * 2               # bf16 weights
                      + L * 4 + U * 4                       # biases
                      + B_pad * U * x.dtype.itemsize)       # out

    out = pl.pallas_call(
        autorec_kernel,
        out_shape=jax.ShapeDtypeStruct((B_pad, U), x.dtype),
        grid=grid,
        in_specs=[
            pl.BlockSpec((tm, U), lambda i: (i, 0)),        # x: streams by batch tile
            pl.BlockSpec((U, L), lambda i: (0, 0)),         # w1: VMEM-resident
            pl.BlockSpec((1, L), lambda i: (0, 0)),         # b1: VMEM-resident
            pl.BlockSpec((L, U), lambda i: (0, 0)),         # w2: VMEM-resident
            pl.BlockSpec((1, U), lambda i: (0, 0)),         # b2: VMEM-resident
        ],
        out_specs=pl.BlockSpec((tm, U), lambda i: (i, 0)),
        compiler_params=pltpu.CompilerParams(
            dimension_semantics=("parallel",)),             # megacore on v7x
        cost_estimate=pl.CostEstimate(
            flops=flops,
            transcendentals=B_pad * L,
            bytes_accessed=bytes_accessed),
    )(x, w1, b1, w2, b2)

    return out[:B]


def init_params(key, num_user, latent_dim, dtype=jnp.float32):
    """Deterministic init mirroring nn.Linear default (uniform +/- 1/sqrt(fan_in))."""
    k1, k2, k3, k4 = jax.random.split(key, 4)
    bound_enc = 1.0 / jnp.sqrt(num_user)
    bound_dec = 1.0 / jnp.sqrt(latent_dim)
    w_enc = jax.random.uniform(k1, (latent_dim, num_user), dtype,
                               minval=-bound_enc, maxval=bound_enc)
    b_enc = jax.random.uniform(k2, (latent_dim,), dtype,
                               minval=-bound_enc, maxval=bound_enc)
    w_dec = jax.random.uniform(k3, (num_user, latent_dim), dtype,
                               minval=-bound_dec, maxval=bound_dec)
    b_dec = jax.random.uniform(k4, (num_user,), dtype,
                               minval=-bound_dec, maxval=bound_dec)
    return w_enc, b_enc, w_dec, b_dec


if __name__ == "__main__":
    batch = 300            # non-multiple of block_m -> exercises padding + 3 grid steps
    num_user = 256
    latent_dim = 128

    key = jax.random.PRNGKey(0)
    kx, kp = jax.random.split(key)
    x = jax.random.normal(kx, (batch, num_user), jnp.float32)
    w_enc, b_enc, w_dec, b_dec = init_params(kp, num_user, latent_dim)

    # one-time weight prep (transpose + bf16 cast), hoisted out of the call path
    w1, b1, w2, b2 = prepare_params(w_enc, b_enc, w_dec, b_dec)

    out = autorec_forward(x, w1, b1, w2, b2)
    out = jax.block_until_ready(out)
    assert out.shape == (batch, num_user)

    # reference 1: same bf16-operand / f32-accum math as the kernel (tight check)
    h_ref = jax.nn.sigmoid(
        jnp.dot(x.astype(jnp.bfloat16), w1, preferred_element_type=jnp.float32) + b1)
    ref_exact = jnp.dot(h_ref.astype(jnp.bfloat16), w2,
                        preferred_element_type=jnp.float32) + b2
    assert jnp.allclose(out, ref_exact, atol=1e-2, rtol=1e-2), (
        "max |diff| vs exact-path ref:", float(jnp.max(jnp.abs(out - ref_exact))))

    # reference 2: full-f32 original module math (loose check for bf16 rounding)
    ref_f32 = jax.nn.sigmoid(x @ w_enc.T + b_enc) @ w_dec.T + b_dec
    assert jnp.allclose(out, ref_f32, atol=3e-2, rtol=3e-2), (
        "max |diff| vs f32 ref:", float(jnp.max(jnp.abs(out - ref_f32))))

    print("KERNEL_OK")
</pallas_src>

<mosaic_0001>
module attributes {stable_mosaic.version = 11 : i64} {
  func.func @autorec_kernel(%arg0: i32, %arg1: memref<128x256xf32, #tpu.memory_space<vmem>>, %arg2: memref<256x128xbf16, #tpu.memory_space<vmem>>, %arg3: memref<1x128xf32, #tpu.memory_space<vmem>>, %arg4: memref<128x256xbf16, #tpu.memory_space<vmem>>, %arg5: memref<1x256xf32, #tpu.memory_space<vmem>>, %arg6: memref<128x256xf32, #tpu.memory_space<vmem>>) attributes {dimension_semantics = [#tpu.dimension_semantics<parallel>], iteration_bounds = array<i64: 3>, scalar_prefetch = 0 : i64, scratch_operands = 0 : i64, tpu.core_type = #tpu.core_type<tc>, window_params = [{transform_indices = @transform_0, window_bounds = array<i64: 128, 256>}, {pipeline_mode = #tpu.pipeline_mode<synchronous>, transform_indices = @transform_1, window_bounds = array<i64: 256, 128>}, {pipeline_mode = #tpu.pipeline_mode<synchronous>, transform_indices = @transform_2, window_bounds = array<i64: 1, 128>}, {pipeline_mode = #tpu.pipeline_mode<synchronous>, transform_indices = @transform_3, window_bounds = array<i64: 128, 256>}, {pipeline_mode = #tpu.pipeline_mode<synchronous>, transform_indices = @transform_4, window_bounds = array<i64: 1, 256>}, {transform_indices = @transform_5, window_bounds = array<i64: 128, 256>}]} {
    %c0 = arith.constant 0 : index
    %c0_0 = arith.constant 0 : index
    %0 = vector.load %arg1[%c0, %c0_0] : memref<128x256xf32, #tpu.memory_space<vmem>>, vector<128x256xf32>
    %1 = arith.truncf %0 : vector<128x256xf32> to vector<128x256xbf16>
    %c0_1 = arith.constant 0 : index
    %c0_2 = arith.constant 0 : index
    %2 = vector.load %arg2[%c0_1, %c0_2] : memref<256x128xbf16, #tpu.memory_space<vmem>>, vector<256x128xbf16>
    %cst = arith.constant dense<0.000000e+00> : vector<128x128xf32>
    %3 = tpu.matmul %1, %2, %cst {dimension_numbers = #tpu.dot_dimension_numbers<[1], [0], [0], [1], [0, 0, 1, 1], [], []>} : vector<128x256xbf16>, vector<256x128xbf16>, vector<128x128xf32> -> vector<128x128xf32>
    %c0_3 = arith.constant 0 : index
    %c0_4 = arith.constant 0 : index
    %4 = vector.load %arg3[%c0_3, %c0_4] : memref<1x128xf32, #tpu.memory_space<vmem>>, vector<1x128xf32>
    %5 = vector.broadcast %4 : vector<1x128xf32> to vector<128x128xf32>
    %6 = arith.addf %3, %5 : vector<128x128xf32>
    %7 = arith.negf %6 : vector<128x128xf32>
    %8 = math.exp %7 : vector<128x128xf32>
    %cst_5 = arith.constant 1.000000e+00 : f32
    %9 = vector.broadcast %cst_5 : f32 to vector<128x128xf32>
    %10 = arith.addf %9, %8 : vector<128x128xf32>
    %11 = arith.divf %9, %10 : vector<128x128xf32>
    %12 = arith.truncf %11 : vector<128x128xf32> to vector<128x128xbf16>
    %c0_6 = arith.constant 0 : index
    %c0_7 = arith.constant 0 : index
    %13 = vector.load %arg4[%c0_6, %c0_7] : memref<128x256xbf16, #tpu.memory_space<vmem>>, vector<128x256xbf16>
    %cst_8 = arith.constant dense<0.000000e+00> : vector<128x256xf32>
    %14 = tpu.matmul %12, %13, %cst_8 {dimension_numbers = #tpu.dot_dimension_numbers<[1], [0], [0], [1], [0, 0, 1, 1], [], []>} : vector<128x128xbf16>, vector<128x256xbf16>, vector<128x256xf32> -> vector<128x256xf32>
    %c0_9 = arith.constant 0 : index
    %c0_10 = arith.constant 0 : index
    %15 = vector.load %arg5[%c0_9, %c0_10] : memref<1x256xf32, #tpu.memory_space<vmem>>, vector<1x256xf32>
    %16 = vector.broadcast %15 : vector<1x256xf32> to vector<128x256xf32>
    %17 = arith.addf %14, %16 : vector<128x256xf32>
    %c0_11 = arith.constant 0 : index
    %c0_12 = arith.constant 0 : index
    %18 = vector.load %arg6[%c0_11, %c0_12] : memref<128x256xf32, #tpu.memory_space<vmem>>, vector<128x256xf32>
    tpu.vector_store %arg6[%c0_11, %c0_12], %17 {strides = array<i32>} : memref<128x256xf32, #tpu.memory_space<vmem>>, vector<128x256xf32>,
    return
  }
  func.func @transform_0(%arg0: i32) -> (i32, i32) {
    %c0_i32 = arith.constant 0 : i32
    %c0_i32_0 = arith.constant 0 : i32
    return %arg0, %c0_i32 : i32, i32
  }
  func.func @transform_1(%arg0: i32) -> (i32, i32) {
    %c0_i32 = arith.constant 0 : i32
    %c0_i32_0 = arith.constant 0 : i32
    %c0_i32_1 = arith.constant 0 : i32
    return %c0_i32, %c0_i32_0 : i32, i32
  }
  func.func @transform_2(%arg0: i32) -> (i32, i32) {
    %c0_i32 = arith.constant 0 : i32
    %c0_i32_0 = arith.constant 0 : i32
    %c0_i32_1 = arith.constant 0 : i32
    return %c0_i32, %c0_i32_0 : i32, i32
  }
  func.func @transform_3(%arg0: i32) -> (i32, i32) {
    %c0_i32 = arith.constant 0 : i32
    %c0_i32_0 = arith.constant 0 : i32
    %c0_i32_1 = arith.constant 0 : i32
    return %c0_i32, %c0_i32_0 : i32, i32
  }
  func.func @transform_4(%arg0: i32) -> (i32, i32) {
    %c0_i32 = arith.constant 0 : i32
    %c0_i32_0 = arith.constant 0 : i32
    %c0_i32_1 = arith.constant 0 : i32
    return %c0_i32, %c0_i32_0 : i32, i32
  }
  func.func @transform_5(%arg0: i32) -> (i32, i32) {
    %c0_i32 = arith.constant 0 : i32
    %c0_i32_0 = arith.constant 0 : i32
    return %arg0, %c0_i32 : i32, i32
  }
}

</mosaic_0001>

<bundles_post_ra>
// kernel: autorec_forward.1
= control target key start
LH: loop header
LB: loop body
LE: loop exit
PB: predicated region body
PF: predicated region fallthrough
CT: control target
= control target key end

     0   :  { %s1415_s18 = smov 0   ;;  %s1830_s0 = inlined_call_operand.vmem [shape: f32[384,256], index: 0, kind: input, shape index: {}]   ;;  %s1831_s1 = inlined_call_operand.vmem [shape: bf16[256,128], index: 1, kind: input, shape index: {}]   ;;  %s1832_s2 = inlined_call_operand.vmem [shape: f32[1,128], index: 2, kind: input, shape index: {}]   ;;  %s1833_s3 = inlined_call_operand.vmem [shape: bf16[128,256], index: 3, kind: input, shape index: {}]   ;;  %s1834_s4 = inlined_call_operand.vmem [shape: f32[1,256], index: 4, kind: input, shape index: {}]   ;;  %s1835_s5 = inlined_call_operand.vmem [shape: f32[384,256], index: 5, kind: output, shape index: {}]  }
   0x1 LB: > { %s1113_s19 = sadd.s32 4294967295, %s1383_s18   ;;  %p1117_p0 = scmp.ge.s32.totalorder %s1383_s18, 1  ;;  %s1383_s18 = sphi %s1415_s18, %s15_s18  }
   0x2   : > { %p189_p1 = scmp.lt.s32.totalorder %s1383_s18, 4 }
   0x4   : > { %p190_p2 = pnand %p1117_p0, %p189_p1 }
   0x5   : > { %s1118_s7 = sshll.u32 (!%p190_p2), %s1113_s19, 4 }
   0x6   : > { %193 = sbr.rel (%p190_p2) target bundleno = 467 (0x1d3), region = 40  ;;  %p220_p3 = scmp.lt.s32.totalorder (!%p190_p2), %s1118_s7, 47 }
   0xb   : > { %v1279_v0 = vld [vmem:[%s1831_s1 + $0x38] sm:$0xff]  ;;  %v1278_v2 = vld [vmem:[%s1831_s1 + $0x30] sm:$0xff]  ;;  %v1277_v4 = vld [vmem:[%s1831_s1 + $0x28] sm:$0xff]  ;;  %s1851_s7 = smov (!%p220_p3, %s1118_s7), 47 }
   0xc   : > { %v1287_v1 = vld [vmem:[%s1831_s1 + $0x78] sm:$0xff]  ;;  %413 = vmatpush.bf16.msra.mxu0 %v1279_v0  ;;  %v1286_v3 = vld [vmem:[%s1831_s1 + $0x70] sm:$0xff]  ;;  %v1285_v5 = vld [vmem:[%s1831_s1 + $0x68] sm:$0xff]  ;;  %s1270_s21 = sshll.u32 %s1851_s7, 4 }
   0xd   : > { %462 = vmatpush.bf16.msra.mxu1 %v1287_v1  ;;  %v1276_v6 = vld [vmem:[%s1831_s1 + $0x20] sm:$0xff]  ;;  %v1275_v8 = vld [vmem:[%s1831_s1 + $0x18] sm:$0xff]  ;;  %v1274_v10 = vld [vmem:[%s1831_s1 + $0x10] sm:$0xff]  ;;  %s1473_s28 = scalar_lea.vmem %s1830_s0, %s1270_s21  ;;  %s1761_s13 = scalar_lea.vmem %s1835_s5, %s1270_s21 }
   0xe   : > { %v1284_v7 = vld [vmem:[%s1831_s1 + $0x60] sm:$0xff]  ;;  %v1283_v9 = vld [vmem:[%s1831_s1 + $0x58] sm:$0xff]  ;;  %v1282_v11 = vld [vmem:[%s1831_s1 + $0x50] sm:$0xff] }
   0xf   : > { %v1273_v12 = vld [vmem:[%s1831_s1 + $0x8] sm:$0xff]  ;;  %v1272_v14 = vld [vmem:[%s1831_s1] sm:$0xff]  ;;  %v235_v17 = vld [vmem:[%s1473_s28 + $0x10] sm:$0xff] }
  0x10   : > { %414 = vmatpush.bf16.msra.mxu0 %v1278_v2  ;;  %v1281_v13 = vld [vmem:[%s1831_s1 + $0x48] sm:$0xff]  ;;  %v1280_v15 = vld [vmem:[%s1831_s1 + $0x40] sm:$0xff]  ;;  %v236_v19 = vld [vmem:[%s1473_s28 + $0x18] sm:$0xff] }
  0x11   : > { %463 = vmatpush.bf16.msra.mxu1 %v1286_v3  ;;  %v233_v16 = vld [vmem:[%s1473_s28] sm:$0xff]  ;;  %v234_v18 = vld [vmem:[%s1473_s28 + $0x8] sm:$0xff]  ;;  %v239_v23 = vld [vmem:[%s1473_s28 + $0x30] sm:$0xff] }
  0x12   : > { %v265_v20 = vpack.c.bf16 %v235_v17, %v233_v16  ;;  %v266_v21 = vpack.c.bf16 %v236_v19, %v234_v18  ;;  %v237_v22 = vld [vmem:[%s1473_s28 + $0x20] sm:$0xff]  ;;  %v238_v24 = vld [vmem:[%s1473_s28 + $0x28] sm:$0xff]  ;;  %v240_v25 = vld [vmem:[%s1473_s28 + $0x38] sm:$0xff] }
  0x13   : > { %v267_v26 = vpack.c.bf16 %v239_v23, %v237_v22  ;;  %v268_v27 = vpack.c.bf16 %v240_v25, %v238_v24  ;;  %v241_v28 = vld [vmem:[%s1473_s28 + $0x40] sm:$0xff]  ;;  %v243_v29 = vld [vmem:[%s1473_s28 + $0x50] sm:$0xff]  ;;  %v242_v30 = vld [vmem:[%s1473_s28 + $0x48] sm:$0xff] }
  0x14   : > { %415 = vmatpush.bf16.msra.mxu0 %v1277_v4  ;;  %v244_v31 = vld [vmem:[%s1473_s28 + $0x58] sm:$0xff]  ;;  %v269_v32 = vpack.c.bf16 %v243_v29, %v241_v28  ;;  %v245_v34 = vld [vmem:[%s1473_s28 + $0x60] sm:$0xff]  ;;  %v247_v35 = vld [vmem:[%s1473_s28 + $0x70] sm:$0xff] }
  0x15   : > { %464 = vmatpush.bf16.msra.mxu1 %v1285_v5  ;;  %v270_v33 = vpack.c.bf16 %v244_v31, %v242_v30  ;;  %v246_v36 = vld [vmem:[%s1473_s28 + $0x68] sm:$0xff]  ;;  %v248_v37 = vld [vmem:[%s1473_s28 + $0x78] sm:$0xff]  ;;  %v271_v38 = vpack.c.bf16 %v247_v35, %v245_v34  ;;  %v249_v40 = vld [vmem:[%s1473_s28 + $0x80] sm:$0xff] }
  0x16   : > { %v272_v39 = vpack.c.bf16 %v248_v37, %v246_v36  ;;  %v251_v41 = vld [vmem:[%s1473_s28 + $0x90] sm:$0xff]  ;;  %v250_v42 = vld [vmem:[%s1473_s28 + $0x88] sm:$0xff]  ;;  %v252_v43 = vld [vmem:[%s1473_s28 + $0x98] sm:$0xff] }
  0x17   : > { %v273_v44 = vpack.c.bf16 %v251_v41, %v249_v40  ;;  %v274_v45 = vpack.c.bf16 %v252_v43, %v250_v42  ;;  %v253_v46 = vld [vmem:[%s1473_s28 + $0xa0] sm:$0xff]  ;;  %v255_v47 = vld [vmem:[%s1473_s28 + $0xb0] sm:$0xff]  ;;  %v254_v48 = vld [vmem:[%s1473_s28 + $0xa8] sm:$0xff] }
  0x18   : > { %416 = vmatpush.bf16.msra.mxu0 %v1276_v6  ;;  %v256_v49 = vld [vmem:[%s1473_s28 + $0xb8] sm:$0xff]  ;;  %v275_v50 = vpack.c.bf16 %v255_v47, %v253_v46  ;;  %v257_v52 = vld [vmem:[%s1473_s28 + $0xc0] sm:$0xff]  ;;  %v259_v53 = vld [vmem:[%s1473_s28 + $0xd0] sm:$0xff] }
  0x19   : > { %465 = vmatpush.bf16.msra.mxu1 %v1284_v7  ;;  %v276_v51 = vpack.c.bf16 %v256_v49, %v254_v48  ;;  %v258_v54 = vld [vmem:[%s1473_s28 + $0xc8] sm:$0xff]  ;;  %v260_v55 = vld [vmem:[%s1473_s28 + $0xd8] sm:$0xff]  ;;  %v277_v56 = vpack.c.bf16 %v259_v53, %v257_v52  ;;  %v1262_v58 = vld [vmem:[%s1833_s3 + $0x70] sm:$0xf] }
  0x1a   : > { %v278_v57 = vpack.c.bf16 %v260_v55, %v258_v54  ;;  %v1303_v59 = vld [vmem:[%s1833_s3 + $0x74] sm:$0xf0]  ;;  %v1302_v60 = vld [vmem:[%s1833_s3 + $0x74] sm:$0xf]  ;;  %v1264_v62 = vld [vmem:[%s1833_s3 + $0x78] sm:$0xf0] }
  0x1b   : > { %v1263_v61 = vor.u32 %v1303_v59, %v1262_v58  ;;  %v261_v63 = vld [vmem:[%s1473_s28 + $0xe0] sm:$0xff]  ;;  %v1267_v0 = vor.u32 %v1302_v60, %v1264_v62  ;;  %v263_v1 = vld [vmem:[%s1473_s28 + $0xf0] sm:$0xff]  ;;  %v262_v2 = vld [vmem:[%s1473_s28 + $0xe8] sm:$0xff] }
  0x1c   : > { %417 = vmatpush.bf16.msra.mxu0 %v1275_v8  ;;  %v264_v3 = vld [vmem:[%s1473_s28 + $0xf8] sm:$0xff]  ;;  %v1254_v4 = vld [vmem:[%s1833_s3 + $0x60] sm:$0xf]  ;;  %v1301_v5 = vld [vmem:[%s1833_s3 + $0x64] sm:$0xf0] }
  0x1d   : > { %466 = vmatpush.bf16.msra.mxu1 %v1283_v9  ;;  %925 = vmatpush.bf16.msra.mxu2 %v1263_v61  ;;  %v1300_v6 = vld [vmem:[%s1833_s3 + $0x64] sm:$0xf]  ;;  %v1255_v7 = vor.u32 %v1301_v5, %v1254_v4  ;;  %v1256_v8 = vld [vmem:[%s1833_s3 + $0x68] sm:$0xf0]  ;;  %v279_v9 = vpack.c.bf16 %v263_v1, %v261_v63  ;;  %v1248_v16 = vld [vmem:[%s1833_s3 + $0x58] sm:$0xf0] }
  0x1e   : > { %974 = vmatpush.bf16.msra.mxu3 %v1267_v0  ;;  %v1238_v18 = vld [vmem:[%s1833_s3 + $0x40] sm:$0xf]  ;;  %v1297_v19 = vld [vmem:[%s1833_s3 + $0x44] sm:$0xf0]  ;;  %v1240_v22 = vld [vmem:[%s1833_s3 + $0x48] sm:$0xf0] }
  0x1f   : > { %v1230_v24 = vld [vmem:[%s1833_s3 + $0x30] sm:$0xf]  ;;  %v1295_v25 = vld [vmem:[%s1833_s3 + $0x34] sm:$0xf0]  ;;  %v1232_v28 = vld [vmem:[%s1833_s3 + $0x38] sm:$0xf0] }
  0x20   : > { %418 = vmatpush.bf16.msra.mxu0 %v1274_v10  ;;  %v280_v10 = vpack.c.bf16 %v264_v3, %v262_v2  ;;  %v1576_v30 = vld [vmem:[%s1832_s2] ss:$0 sm:$0xff]  ;;  %v1224_v35 = vld [vmem:[%s1833_s3 + $0x28] sm:$0xf0]  ;;  %v1214_v40 = vld [vmem:[%s1833_s3 + $0x10] sm:$0xf] }
  0x21   : > { %467 = vmatpush.bf16.msra.mxu1 %v1282_v11  ;;  %v1259_v11 = vor.u32 %v1300_v6, %v1256_v8  ;;  %926 = vmatpush.bf16.msra.mxu2 %v1255_v7  ;;  %v1222_v31 = vld [vmem:[%s1833_s3 + $0x20] sm:$0xf]  ;;  %v1291_v41 = vld [vmem:[%s1833_s3 + $0x14] sm:$0xf0]  ;;  %v1290_v42 = vld [vmem:[%s1833_s3 + $0x14] sm:$0xf] }
  0x22   : > { %v1215_v43 = vor.u32 %v1291_v41, %v1214_v40  ;;  %v1206_v48 = vld [vmem:[%s1833_s3] sm:$0xf]  ;;  %v1289_v49 = vld [vmem:[%s1833_s3 + $0x4] sm:$0xf0]  ;;  %v1208_v52 = vld [vmem:[%s1833_s3 + $0x8] sm:$0xf0] }
  0x23   : > { %975 = vmatpush.bf16.msra.mxu3 %v1259_v11 }
  0x24   : > { %419 = vmatpush.bf16.msra.mxu0 %v1273_v12  ;;  %v1246_v12 = vld [vmem:[%s1833_s3 + $0x50] sm:$0xf] }
  0x25   : > { %468 = vmatpush.bf16.msra.mxu1 %v1281_v13  ;;  %v1299_v13 = vld [vmem:[%s1833_s3 + $0x54] sm:$0xf0] }
  0x28   : > { %420 = vmatpush.bf16.msra.mxu0 %v1272_v14  ;;  %v1298_v14 = vld [vmem:[%s1833_s3 + $0x54] sm:$0xf] }
  0x29   : > { %469 = vmatpush.bf16.msra.mxu1 %v1280_v15  ;;  %v1247_v15 = vor.u32 %v1299_v13, %v1246_v12  ;;  %v1251_v17 = vor.u32 %v1298_v14, %v1248_v16 }
  0x2b   : > { %421 = vmatmul.bf16.vlgmr.msra.gmra.mxu0 %v265_v20  ;;  %927 = vmatpush.bf16.msra.mxu2 %v1247_v15  ;;  %v1296_v20 = vld [vmem:[%s1833_s3 + $0x44] sm:$0xf] }
  0x2c   : > { %470 = vmatmul.bf16.vlgmr.msra.gmra.mxu1 %v266_v21  ;;  %976 = vmatpush.bf16.msra.mxu3 %v1251_v17  ;;  %v1239_v21 = vor.u32 %v1297_v19, %v1238_v18  ;;  %v1243_v23 = vor.u32 %v1296_v20, %v1240_v22 }
  0x2f   : > { %928 = vmatpush.bf16.msra.mxu2 %v1239_v21 }
  0x30   : > { %977 = vmatpush.bf16.msra.mxu3 %v1243_v23 }
  0x3b   : > { %426 = vmatmul.bf16.gmra.mxu0 %v267_v26  ;;  %v1294_v26 = vld [vmem:[%s1833_s3 + $0x34] sm:$0xf] }
  0x3c   : > { %475 = vmatmul.bf16.gmra.mxu1 %v268_v27  ;;  %v1231_v27 = vor.u32 %v1295_v25, %v1230_v24  ;;  %v1235_v29 = vor.u32 %v1294_v26, %v1232_v28 }
  0x3e   : > { %929 = vmatpush.bf16.msra.mxu2 %v1231_v27  ;;  %978 = vmatpush.bf16.msra.mxu3 %v1235_v29 }
  0x4b   : > { %431 = vmatmul.bf16.gmra.mxu0 %v269_v32  ;;  %v1293_v32 = vld [vmem:[%s1833_s3 + $0x24] sm:$0xf0] }
  0x4c   : > { %480 = vmatmul.bf16.gmra.mxu1 %v270_v33  ;;  %v1292_v33 = vld [vmem:[%s1833_s3 + $0x24] sm:$0xf]  ;;  %v1223_v34 = vor.u32 %v1293_v32, %v1222_v31 }
  0x4d   : > { %v1227_v36 = vor.u32 %v1292_v33, %v1224_v35 }
  0x4e   : > { %930 = vmatpush.bf16.msra.mxu2 %v1223_v34 }
  0x4f   : > { %979 = vmatpush.bf16.msra.mxu3 %v1227_v36 }
  0x52   : > { %931 = vmatpush.bf16.msra.mxu2 %v1215_v43 }
  0x5b   : > { %436 = vmatmul.bf16.gmra.mxu0 %v271_v38 }
  0x5c   : > { %485 = vmatmul.bf16.gmra.mxu1 %v272_v39 }
  0x6b   : > { %441 = vmatmul.bf16.gmra.mxu0 %v273_v44  ;;  %v1216_v44 = vld [vmem:[%s1833_s3 + $0x18] sm:$0xf0] }
  0x6c   : > { %490 = vmatmul.bf16.gmra.mxu1 %v274_v45  ;;  %v1219_v46 = vor.u32 %v1290_v42, %v1216_v44 }
  0x6e   : > { %980 = vmatpush.bf16.msra.mxu3 %v1219_v46 }
  0x7b   : > { %446 = vmatmul.bf16.gmra.mxu0 %v275_v50  ;;  %v1207_v50 = vor.u32 %v1289_v49, %v1206_v48 }
  0x7c   : > { %495 = vmatmul.bf16.gmra.mxu1 %v276_v51  ;;  %v1288_v51 = vld [vmem:[%s1833_s3 + $0x4] sm:$0xf] }
  0x7d   : > { %v1211_v53 = vor.u32 %v1288_v51, %v1208_v52  ;;  %932 = vmatpush.bf16.msra.mxu2 %v1207_v50 }
  0x7f   : > { %981 = vmatpush.bf16.msra.mxu3 %v1211_v53 }
  0x8b   : > { %451 = vmatmul.bf16.gmra.mxu0 %v277_v56 }
  0x8c   : > { %500 = vmatmul.bf16.gmra.mxu1 %v278_v57 }
  0x9b   : > { %456 = vmatmul.bf16.gmra.mxu0 %v279_v9 }
  0x9c   : > { %505 = vmatmul.bf16.gmra.mxu1 %v280_v10 }
  0xa8   : > { %v422_v37 = vpop.f32.mrf.mxu0 }
  0xa9   : > { %v471_v38 = vpop.f32.mrf.mxu1  ;;  %v423_v39 = vadd.f32 %v1576_v30, %v422_v37 }
  0xab   : > { %v472_v45 = vadd.f32 %v471_v38, %v423_v39 }
  0xad   : > { %v1188_v47 = vmul.f32 -1.442695, %v472_v45 }
  0xaf   : > { %1313 = vpow2.f32 %v1188_v47 }
  0xb0   : > { %v424_v54 = vpop.f32.mrf.mxu0 }
  0xb1   : > { %v473_v55 = vpop.f32.mrf.mxu1  ;;  %v425_v56 = vadd.f32 %v1576_v30, %v424_v54 }
  0xb3   : > { %v474_v57 = vadd.f32 %v473_v55, %v425_v56 }
  0xb5   : > { %v1314_v58 = vpop.eup %1313  ;;  %v1189_v59 = vmul.f32 -1.442695, %v474_v57 }
  0xb6   : > { %v559_v60 = vadd.f32 1.0, %v1314_v58 }
  0xb7   : > { %1315 = vpow2.f32 %v1189_v59 }
  0xb8   : > { %1317 = vrcp.f32 %v559_v60  ;;  %v427_v61 = vpop.f32.mrf.mxu0  ;;  %vm580_vm1 = vweird.f32 %v559_v60  ;;  %v584_v22 = vand.u32 2147483647, %v559_v60  ;;  %v586_v23 = vand.u32 2147483648, %v559_v60 }
  0xb9   : > { %v476_v62 = vpop.f32.mrf.mxu1  ;;  %v428_v63 = vadd.f32 %v1576_v30, %v427_v61 }
  0xba   : > { %vm585_vm5 = vcmp.eq.f32.partialorder %v584_v22, 8.507059e+37  ;;  %v587_v36 = vor.u32 1.1754944e-38, %v586_v23 }
  0xbb   : > { %v477_v0 = vadd.f32 %v476_v62, %v428_v63 }
  0xbd   : > { %v1316_v1 = vpop.eup %1315  ;;  %v1190_v2 = vmul.f32 -1.442695, %v477_v0 }
  0xbe   : > { %v1318_v3 = vpop.eup %1317  ;;  %v560_v4 = vadd.f32 1.0, %v1316_v1 }
  0xbf   : > { %1319 = vpow2.f32 %v1190_v2  ;;  %v576_v5 = vmul.f32 %v1318_v3, %v559_v60  ;;  %vm581_vm0 = vweird.f32 %v1318_v3 }
  0xc0   : > { %1321 = vrcp.f32 %v560_v4  ;;  %v429_v6 = vpop.f32.mrf.mxu0  ;;  %v601_v24 = vand.u32 2147483648, %v560_v4  ;;  %v599_v27 = vand.u32 2147483647, %v560_v4  ;;  %vm1622_vm3 = vmor %vm580_vm1, %vm581_vm0  ;;  %vm595_vm4 = vweird.f32 %v560_v4 }
  0xc1   : > { %v478_v7 = vpop.f32.mrf.mxu1  ;;  %v430_v8 = vadd.f32 %v1576_v30, %v429_v6  ;;  %v577_v9 = vsub.f32 1.0, %v576_v5 }
  0xc2   : > { %v602_v37 = vor.u32 1.1754944e-38, %v601_v24  ;;  %vm600_vm7 = vcmp.eq.f32.partialorder %v599_v27, 8.507059e+37 }
  0xc3   : > { %v479_v10 = vadd.f32 %v478_v7, %v430_v8  ;;  %v578_v13 = vmul.f32 %v1318_v3, %v577_v9 }
  0xc5   : > { %v1320_v11 = vpop.eup %1319  ;;  %v1191_v12 = vmul.f32 -1.442695, %v479_v10  ;;  %v579_v20 = vadd.f32 %v1318_v3, %v578_v13 }
  0xc6   : > { %v1322_v14 = vpop.eup %1321  ;;  %v1618_v15 = vadd.f32 1.0, %v1320_v11 }
  0xc7   : > { %1323 = vpow2.f32 %v1191_v12  ;;  %v591_v16 = vmul.f32 %v1322_v14, %v560_v4  ;;  %vm596_vm2 = vweird.f32 %v1322_v14  ;;  %v583_v32 = vsel %vm1622_vm3, %v1318_v3, %v579_v20 }
  0xc8   : > { %1325 = vrcp.f32 %v1618_v15  ;;  %v432_v17 = vpop.f32.mrf.mxu0  ;;  %vm597_vm6 = vmor %vm595_vm4, %vm596_vm2  ;;  %v588_v42 = vsel %vm585_vm5, %v587_v36, %v583_v32  ;;  %vm610_vm9 = vweird.f32 %v1618_v15  ;;  %v614_v59 = vand.u32 2147483647, %v1618_v15 }
  0xc9   : > { %v481_v18 = vpop.f32.mrf.mxu1  ;;  %v433_v19 = vadd.f32 %v1576_v30, %v432_v17  ;;  %v592_v21 = vsub.f32 1.0, %v591_v16  ;;  %v616_v60 = vand.u32 2147483648, %v1618_v15 }
  0xca   : > { %vm615_vm13 = vcmp.eq.f32.partialorder %v614_v59, 8.507059e+37 }
  0xcb   : > { %v482_v25 = vadd.f32 %v481_v18, %v433_v19  ;;  %v593_v26 = vmul.f32 %v1322_v14, %v592_v21  ;;  %v617_v8 = vor.u32 1.1754944e-38, %v616_v60 }
  0xcd   : > { %v1324_v29 = vpop.eup %1323  ;;  %v1192_v31 = vmul.f32 -1.442695, %v482_v25  ;;  %v594_v33 = vadd.f32 %v1322_v14, %v593_v26 }
  0xce   : > { %v1628_v34 = vpop.eup %1325  ;;  %v562_v35 = vadd.f32 1.0, %v1324_v29 }
  0xcf   : > { %1327 = vpow2.f32 %v1192_v31  ;;  %v598_v38 = vsel %vm597_vm6, %v1322_v14, %v594_v33  ;;  %v606_v39 = vmul.f32 %v1628_v34, %v1618_v15  ;;  %vm611_vm8 = vweird.f32 %v1628_v34 }
  0xd0   : > { %1329 = vrcp.f32 %v562_v35  ;;  %v434_v40 = vpop.f32.mrf.mxu0  ;;  %v603_v43 = vsel %vm600_vm7, %v602_v37, %v598_v38  ;;  %v631_v61 = vand.u32 2147483648, %v562_v35  ;;  %v629_v0 = vand.u32 2147483647, %v562_v35  ;;  %vm1643_vm11 = vmor %vm610_vm9, %vm611_vm8 }
  0xd1   : > { %v483_v41 = vpop.f32.mrf.mxu1  ;;  %v435_v44 = vadd.f32 %v1576_v30, %v434_v40  ;;  %v815_v45 = vpack.c.bf16 %v603_v43, %v588_v42  ;;  %v607_v46 = vsub.f32 1.0, %v606_v39  ;;  %vm625_vm12 = vweird.f32 %v562_v35 }
  0xd2   : > { %v632_v9 = vor.u32 1.1754944e-38, %v631_v61  ;;  %vm630_vm15 = vcmp.eq.f32.partialorder %v629_v0, 8.507059e+37 }
  0xd3   : > { %v484_v47 = vadd.f32 %v483_v41, %v435_v44  ;;  %933 = vmatmul.bf16.vlgmr.msra.gmra.mxu2 %v815_v45  ;;  %982 = vmatmul.bf16.vlgmr.msra.gmra.mxu3 %v815_v45  ;;  %v608_v50 = vmul.f32 %v1628_v34, %v607_v46 }
  0xd5   : > { %v1328_v48 = vpop.eup %1327  ;;  %v1193_v49 = vmul.f32 -1.442695, %v484_v47  ;;  %v609_v57 = vadd.f32 %v1628_v34, %v608_v50 }
  0xd6   : > { %v1330_v51 = vpop.eup %1329  ;;  %v1634_v52 = vadd.f32 1.0, %v1328_v48 }
  0xd7   : > { %1331 = vpow2.f32 %v1193_v49  ;;  %v621_v53 = vmul.f32 %v1330_v51, %v562_v35  ;;  %vm626_vm10 = vweird.f32 %v1330_v51  ;;  %v613_v4 = vsel %vm1643_vm11, %v1628_v34, %v609_v57 }
  0xd8   : > { %1333 = vrcp.f32 %v1634_v52  ;;  %v437_v54 = vpop.f32.mrf.mxu0  ;;  %vm627_vm14 = vmor %vm625_vm12, %vm626_vm10  ;;  %v618_v14 = vsel %vm615_vm13, %v617_v8, %v613_v4  ;;  %vm640_vm1 = vweird.f32 %v1634_v52  ;;  %v644_v32 = vand.u32 2147483647, %v1634_v52 }
  0xd9   : > { %v486_v55 = vpop.f32.mrf.mxu1  ;;  %v438_v56 = vadd.f32 %v1576_v30, %v437_v54  ;;  %v622_v58 = vsub.f32 1.0, %v621_v53  ;;  %v646_v33 = vand.u32 2147483648, %v1634_v52 }
  0xda   : > { %vm645_vm5 = vcmp.eq.f32.partialorder %v644_v32, 8.507059e+37 }
  0xdb   : > { %v487_v62 = vadd.f32 %v486_v55, %v438_v56  ;;  %v623_v63 = vmul.f32 %v1330_v51, %v622_v58  ;;  %v647_v45 = vor.u32 1.1754944e-38, %v646_v33 }
  0xdd   : > { %v1332_v2 = vpop.eup %1331  ;;  %v1194_v3 = vmul.f32 -1.442695, %v487_v62  ;;  %v624_v5 = vadd.f32 %v1330_v51, %v623_v63 }
  0xde   : > { %v1650_v6 = vpop.eup %1333  ;;  %v564_v7 = vadd.f32 1.0, %v1332_v2 }
  0xdf   : > { %1335 = vpow2.f32 %v1194_v3  ;;  %v628_v10 = vsel %vm627_vm14, %v1330_v51, %v624_v5  ;;  %v636_v11 = vmul.f32 %v1650_v6, %v1634_v52  ;;  %vm641_vm0 = vweird.f32 %v1650_v6 }
  0xe0   : > { %1337 = vrcp.f32 %v564_v7  ;;  %v439_v12 = vpop.f32.mrf.mxu0  ;;  %v633_v15 = vsel %vm630_vm15, %v632_v9, %v628_v10  ;;  %v661_v34 = vand.u32 2147483648, %v564_v7  ;;  %v659_v37 = vand.u32 2147483647, %v564_v7  ;;  %vm1665_vm3 = vmor %vm640_vm1, %vm641_vm0 }
  0xe1   : > { %v488_v13 = vpop.f32.mrf.mxu1  ;;  %v440_v16 = vadd.f32 %v1576_v30, %v439_v12  ;;  %v816_v17 = vpack.c.bf16 %v633_v15, %v618_v14  ;;  %v637_v18 = vsub.f32 1.0, %v636_v11  ;;  %vm655_vm4 = vweird.f32 %v564_v7 }
  0xe2   : > { %v662_v46 = vor.u32 1.1754944e-38, %v661_v34  ;;  %vm660_vm7 = vcmp.eq.f32.partialorder %v659_v37, 8.507059e+37 }
  0xe3   : > { %v489_v19 = vadd.f32 %v488_v13, %v440_v16  ;;  %938 = vmatmul.bf16.gmra.mxu2 %v816_v17  ;;  %987 = vmatmul.bf16.gmra.mxu3 %v816_v17  ;;  %v638_v22 = vmul.f32 %v1650_v6, %v637_v18 }
  0xe5   : > { %v1336_v20 = vpop.eup %1335  ;;  %v1195_v21 = vmul.f32 -1.442695, %v489_v19  ;;  %v639_v29 = vadd.f32 %v1650_v6, %v638_v22 }
  0xe6   : > { %v1338_v23 = vpop.eup %1337  ;;  %v1656_v24 = vadd.f32 1.0, %v1336_v20 }
  0xe7   : > { %1339 = vpow2.f32 %v1195_v21  ;;  %v651_v25 = vmul.f32 %v1338_v23, %v564_v7  ;;  %vm656_vm2 = vweird.f32 %v1338_v23  ;;  %v643_v41 = vsel %vm1665_vm3, %v1650_v6, %v639_v29 }
  0xe8   : > { %1341 = vrcp.f32 %v1656_v24  ;;  %v442_v26 = vpop.f32.mrf.mxu0  ;;  %vm657_vm6 = vmor %vm655_vm4, %vm656_vm2  ;;  %v648_v51 = vsel %vm645_vm5, %v647_v45, %v643_v41  ;;  %vm670_vm9 = vweird.f32 %v1656_v24  ;;  %v674_v4 = vand.u32 2147483647, %v1656_v24 }
  0xe9   : > { %v491_v27 = vpop.f32.mrf.mxu1  ;;  %v443_v28 = vadd.f32 %v1576_v30, %v442_v26  ;;  %v652_v31 = vsub.f32 1.0, %v651_v25  ;;  %v676_v5 = vand.u32 2147483648, %v1656_v24 }
  0xea   : > { %vm675_vm13 = vcmp.eq.f32.partialorder %v674_v4, 8.507059e+37 }
  0xeb   : > { %v492_v35 = vadd.f32 %v491_v27, %v443_v28  ;;  %v653_v36 = vmul.f32 %v1338_v23, %v652_v31  ;;  %v677_v17 = vor.u32 1.1754944e-38, %v676_v5 }
  0xed   : > { %v1340_v39 = vpop.eup %1339  ;;  %v1196_v40 = vmul.f32 -1.442695, %v492_v35  ;;  %v654_v42 = vadd.f32 %v1338_v23, %v653_v36 }
  0xee   : > { %v1672_v43 = vpop.eup %1341  ;;  %v566_v44 = vadd.f32 1.0, %v1340_v39 }
  0xef   : > { %1343 = vpow2.f32 %v1196_v40  ;;  %v658_v47 = vsel %vm657_vm6, %v1338_v23, %v654_v42  ;;  %v666_v48 = vmul.f32 %v1672_v43, %v1656_v24  ;;  %vm671_vm8 = vweird.f32 %v1672_v43 }
  0xf0   : > { %1345 = vrcp.f32 %v566_v44  ;;  %v444_v49 = vpop.f32.mrf.mxu0  ;;  %v663_v52 = vsel %vm660_vm7, %v662_v46, %v658_v47  ;;  %v691_v6 = vand.u32 2147483648, %v566_v44  ;;  %v689_v9 = vand.u32 2147483647, %v566_v44  ;;  %vm1687_vm11 = vmor %vm670_vm9, %vm671_vm8 }
  0xf1   : > { %v493_v50 = vpop.f32.mrf.mxu1  ;;  %v445_v53 = vadd.f32 %v1576_v30, %v444_v49  ;;  %v817_v54 = vpack.c.bf16 %v663_v52, %v648_v51  ;;  %v667_v55 = vsub.f32 1.0, %v666_v48  ;;  %vm685_vm12 = vweird.f32 %v566_v44 }
  0xf2   : > { %v692_v18 = vor.u32 1.1754944e-38, %v691_v6  ;;  %vm690_vm15 = vcmp.eq.f32.partialorder %v689_v9, 8.507059e+37 }
  0xf3   : > { %v494_v56 = vadd.f32 %v493_v50, %v445_v53  ;;  %943 = vmatmul.bf16.gmra.mxu2 %v817_v54  ;;  %992 = vmatmul.bf16.gmra.mxu3 %v817_v54  ;;  %v668_v59 = vmul.f32 %v1672_v43, %v667_v55 }
  0xf5   : > { %v1344_v57 = vpop.eup %1343  ;;  %v1197_v58 = vmul.f32 -1.442695, %v494_v56  ;;  %v669_v2 = vadd.f32 %v1672_v43, %v668_v59 }
  0xf6   : > { %v1346_v60 = vpop.eup %1345  ;;  %v1678_v61 = vadd.f32 1.0, %v1344_v57 }
  0xf7   : > { %1347 = vpow2.f32 %v1197_v58  ;;  %v681_v62 = vmul.f32 %v1346_v60, %v566_v44  ;;  %vm686_vm10 = vweird.f32 %v1346_v60  ;;  %v673_v13 = vsel %vm1687_vm11, %v1672_v43, %v669_v2 }
  0xf8   : > { %1349 = vrcp.f32 %v1678_v61  ;;  %v447_v63 = vpop.f32.mrf.mxu0  ;;  %vm687_vm14 = vmor %vm685_vm12, %vm686_vm10  ;;  %v678_v23 = vsel %vm675_vm13, %v677_v17, %v673_v13  ;;  %vm700_vm1 = vweird.f32 %v1678_v61  ;;  %v704_v41 = vand.u32 2147483647, %v1678_v61 }
  0xf9   : > { %v496_v0 = vpop.f32.mrf.mxu1  ;;  %v448_v1 = vadd.f32 %v1576_v30, %v447_v63  ;;  %v682_v3 = vsub.f32 1.0, %v681_v62  ;;  %v706_v42 = vand.u32 2147483648, %v1678_v61 }
  0xfa   : > { %vm705_vm5 = vcmp.eq.f32.partialorder %v704_v41, 8.507059e+37 }
  0xfb   : > { %v497_v7 = vadd.f32 %v496_v0, %v448_v1  ;;  %v683_v8 = vmul.f32 %v1346_v60, %v682_v3  ;;  %v707_v54 = vor.u32 1.1754944e-38, %v706_v42 }
  0xfd   : > { %v1348_v11 = vpop.eup %1347  ;;  %v1198_v12 = vmul.f32 -1.442695, %v497_v7  ;;  %v684_v14 = vadd.f32 %v1346_v60, %v683_v8 }
  0xfe   : > { %v1694_v15 = vpop.eup %1349  ;;  %v568_v16 = vadd.f32 1.0, %v1348_v11 }
  0xff   : > { %1351 = vpow2.f32 %v1198_v12  ;;  %v688_v19 = vsel %vm687_vm14, %v1346_v60, %v684_v14  ;;  %v696_v20 = vmul.f32 %v1694_v15, %v1678_v61  ;;  %vm701_vm0 = vweird.f32 %v1694_v15 }
 0x100   : > { %1353 = vrcp.f32 %v568_v16  ;;  %v449_v21 = vpop.f32.mrf.mxu0  ;;  %v693_v24 = vsel %vm690_vm15, %v692_v18, %v688_v19  ;;  %v721_v43 = vand.u32 2147483648, %v568_v16  ;;  %v719_v46 = vand.u32 2147483647, %v568_v16  ;;  %vm1709_vm3 = vmor %vm700_vm1, %vm701_vm0  ;;  %v839_v19 = vld [vmem:[%s1834_s4] sm:$0x3] }
 0x101   : > { %v498_v22 = vpop.f32.mrf.mxu1  ;;  %v450_v25 = vadd.f32 %v1576_v30, %v449_v21  ;;  %v818_v26 = vpack.c.bf16 %v693_v24, %v678_v23  ;;  %v697_v27 = vsub.f32 1.0, %v696_v20  ;;  %vm715_vm4 = vweird.f32 %v568_v16 }
 0x102   : > { %v722_v55 = vor.u32 1.1754944e-38, %v721_v43  ;;  %vm720_vm7 = vcmp.eq.f32.partialorder %v719_v46, 8.507059e+37 }
 0x103   : > { %v499_v28 = vadd.f32 %v498_v22, %v450_v25  ;;  %948 = vmatmul.bf16.gmra.mxu2 %v818_v26  ;;  %997 = vmatmul.bf16.gmra.mxu3 %v818_v26  ;;  %v698_v32 = vmul.f32 %v1694_v15, %v697_v27 }
 0x105   : > { %v1352_v29 = vpop.eup %1351  ;;  %v1199_v31 = vmul.f32 -1.442695, %v499_v28  ;;  %v699_v39 = vadd.f32 %v1694_v15, %v698_v32 }
 0x106   : > { %v1354_v33 = vpop.eup %1353  ;;  %v1700_v34 = vadd.f32 1.0, %v1352_v29 }
 0x107   : > { %1355 = vpow2.f32 %v1199_v31  ;;  %v711_v35 = vmul.f32 %v1354_v33, %v568_v16  ;;  %vm716_vm2 = vweird.f32 %v1354_v33  ;;  %v703_v50 = vsel %vm1709_vm3, %v1694_v15, %v699_v39 }
 0x108   : > { %1357 = vrcp.f32 %v1700_v34  ;;  %v452_v36 = vpop.f32.mrf.mxu0  ;;  %vm717_vm6 = vmor %vm715_vm4, %vm716_vm2  ;;  %v708_v60 = vsel %vm705_vm5, %v707_v54, %v703_v50  ;;  %vm730_vm9 = vweird.f32 %v1700_v34  ;;  %v734_v13 = vand.u32 2147483647, %v1700_v34 }
 0x109   : > { %v501_v37 = vpop.f32.mrf.mxu1  ;;  %v453_v38 = vadd.f32 %v1576_v30, %v452_v36  ;;  %v712_v40 = vsub.f32 1.0, %v711_v35  ;;  %v736_v14 = vand.u32 2147483648, %v1700_v34 }
 0x10a   : > { %vm735_vm13 = vcmp.eq.f32.partialorder %v734_v13, 8.507059e+37 }
 0x10b   : > { %v502_v44 = vadd.f32 %v501_v37, %v453_v38  ;;  %v713_v45 = vmul.f32 %v1354_v33, %v712_v40  ;;  %v737_v26 = vor.u32 1.1754944e-38, %v736_v14 }
 0x10d   : > { %v1356_v48 = vpop.eup %1355  ;;  %v1200_v49 = vmul.f32 -1.442695, %v502_v44  ;;  %v714_v51 = vadd.f32 %v1354_v33, %v713_v45 }
 0x10e   : > { %v1716_v52 = vpop.eup %1357  ;;  %v570_v53 = vadd.f32 1.0, %v1356_v48 }
 0x10f   : > { %1359 = vpow2.f32 %v1200_v49  ;;  %v718_v56 = vsel %vm717_vm6, %v1354_v33, %v714_v51  ;;  %v726_v57 = vmul.f32 %v1716_v52, %v1700_v34  ;;  %vm731_vm8 = vweird.f32 %v1716_v52 }
 0x110   : > { %1361 = vrcp.f32 %v570_v53  ;;  %v454_v58 = vpop.f32.mrf.mxu0  ;;  %v723_v61 = vsel %vm720_vm7, %v722_v55, %v718_v56  ;;  %v751_v15 = vand.u32 2147483648, %v570_v53  ;;  %v749_v18 = vand.u32 2147483647, %v570_v53  ;;  %vm1731_vm11 = vmor %vm730_vm9, %vm731_vm8 }
 0x111   : > { %v503_v59 = vpop.f32.mrf.mxu1  ;;  %v455_v62 = vadd.f32 %v1576_v30, %v454_v58  ;;  %v819_v63 = vpack.c.bf16 %v723_v61, %v708_v60  ;;  %v727_v0 = vsub.f32 1.0, %v726_v57  ;;  %vm745_vm12 = vweird.f32 %v570_v53 }
 0x112   : > { %v752_v27 = vor.u32 1.1754944e-38, %v751_v15  ;;  %vm750_vm15 = vcmp.eq.f32.partialorder %v749_v18, 8.507059e+37 }
 0x113   : > { %v504_v1 = vadd.f32 %v503_v59, %v455_v62  ;;  %953 = vmatmul.bf16.gmra.mxu2 %v819_v63  ;;  %1002 = vmatmul.bf16.gmra.mxu3 %v819_v63  ;;  %v728_v4 = vmul.f32 %v1716_v52, %v727_v0 }
 0x115   : > { %v1360_v2 = vpop.eup %1359  ;;  %v1201_v3 = vmul.f32 -1.442695, %v504_v1  ;;  %v729_v11 = vadd.f32 %v1716_v52, %v728_v4 }
 0x116   : > { %v1362_v5 = vpop.eup %1361  ;;  %v1722_v6 = vadd.f32 1.0, %v1360_v2 }
 0x117   : > { %1363 = vpow2.f32 %v1201_v3  ;;  %v741_v7 = vmul.f32 %v1362_v5, %v570_v53  ;;  %vm746_vm10 = vweird.f32 %v1362_v5  ;;  %v733_v22 = vsel %vm1731_vm11, %v1716_v52, %v729_v11 }
 0x118   : > { %1365 = vrcp.f32 %v1722_v6  ;;  %v457_v8 = vpop.f32.mrf.mxu0  ;;  %vm747_vm14 = vmor %vm745_vm12, %vm746_vm10  ;;  %v738_v32 = vsel %vm735_vm13, %v737_v26, %v733_v22  ;;  %vm760_vm1 = vweird.f32 %v1722_v6  ;;  %v764_v48 = vand.u32 2147483647, %v1722_v6 }
 0x119   : > { %v506_v9 = vpop.f32.mrf.mxu1  ;;  %v458_v10 = vadd.f32 %v1576_v30, %v457_v8  ;;  %v742_v12 = vsub.f32 1.0, %v741_v7 }
 0x11a   : > { %vm765_vm6 = vcmp.eq.f32.partialorder %v764_v48, 8.507059e+37 }
 0x11b   : > { %v507_v16 = vadd.f32 %v506_v9, %v458_v10  ;;  %v743_v17 = vmul.f32 %v1362_v5, %v742_v12 }
 0x11d   : > { %v1364_v20 = vpop.eup %1363  ;;  %v1202_v21 = vmul.f32 -1.442695, %v507_v16  ;;  %v744_v23 = vadd.f32 %v1362_v5, %v743_v17 }
 0x11e   : > { %v1366_v24 = vpop.eup %1365  ;;  %v572_v25 = vadd.f32 1.0, %v1364_v20  ;;  %v1752_v20 = vperm.slane %v839_v19, 0 }
 0x11f   : > { %1367 = vpow2.f32 %v1202_v21  ;;  %v748_v28 = vsel %vm747_vm14, %v1362_v5, %v744_v23  ;;  %v756_v29 = vmul.f32 %v1366_v24, %v1722_v6  ;;  %vm761_vm0 = vweird.f32 %v1366_v24 }
 0x120   : > { %1369 = vrcp.f32 %v572_v25  ;;  %v459_v31 = vpop.f32.mrf.mxu0  ;;  %v753_v33 = vsel %vm750_vm15, %v752_v27, %v748_v28  ;;  %v781_v47 = vand.u32 2147483648, %v572_v25  ;;  %v779_v50 = vand.u32 2147483647, %v572_v25  ;;  %vm1743_vm3 = vmor %vm760_vm1, %vm761_vm0 }
 0x121   : > { %v460_v34 = vadd.f32 %v1576_v30, %v459_v31  ;;  %v820_v35 = vpack.c.bf16 %v753_v33, %v738_v32  ;;  %v757_v36 = vsub.f32 1.0, %v756_v29  ;;  %v508_v37 = vpop.f32.mrf.mxu1  ;;  %v766_v30 = vand.u32 2147483648, %v1722_v6 }
 0x122   : > { %vm775_vm4 = vweird.f32 %v572_v25  ;;  %v782_v58 = vor.u32 1.1754944e-38, %v781_v47  ;;  %vm780_vm7 = vcmp.eq.f32.partialorder %v779_v50, 8.507059e+37  ;;  %v1754_v21 = vperm.slane %v839_v19, 1 }
 0x123   : > { %v509_v38 = vadd.f32 %v508_v37, %v460_v34  ;;  %958 = vmatmul.bf16.gmra.mxu2 %v820_v35  ;;  %1007 = vmatmul.bf16.gmra.mxu3 %v820_v35  ;;  %v758_v41 = vmul.f32 %v1366_v24, %v757_v36  ;;  %v767_v57 = vor.u32 1.1754944e-38, %v766_v30 }
 0x125   : > { %v1368_v39 = vpop.eup %1367  ;;  %v1203_v40 = vmul.f32 -1.442695, %v509_v38  ;;  %v759_v45 = vadd.f32 %v1366_v24, %v758_v41 }
 0x126   : > { %v1370_v42 = vpop.eup %1369  ;;  %v573_v43 = vadd.f32 1.0, %v1368_v39 }
 0x127   : > { %1371 = vpow2.f32 %v1203_v40  ;;  %v771_v44 = vmul.f32 %v1370_v42, %v572_v25  ;;  %vm776_vm2 = vweird.f32 %v1370_v42  ;;  %v763_v53 = vsel %vm1743_vm3, %v1366_v24, %v759_v45 }
 0x128   : > { %1373 = vrcp.f32 %v573_v43  ;;  %vm777_vm5 = vmor %vm775_vm4, %vm776_vm2  ;;  %v768_v61 = vsel %vm765_vm6, %v767_v57, %v763_v53  ;;  %vm790_vm9 = vweird.f32 %v573_v43  ;;  %v796_v6 = vand.u32 2147483648, %v573_v43 }
 0x129   : > { %v772_v46 = vsub.f32 1.0, %v771_v44  ;;  %v794_v8 = vand.u32 2147483647, %v573_v43 }
 0x12a   : > { %v797_v13 = vor.u32 1.1754944e-38, %v796_v6 }
 0x12b   : > { %v773_v49 = vmul.f32 %v1370_v42, %v772_v46  ;;  %vm795_vm14 = vcmp.eq.f32.partialorder %v794_v8, 8.507059e+37 }
 0x12d   : > { %v1372_v52 = vpop.eup %1371  ;;  %v774_v54 = vadd.f32 %v1370_v42, %v773_v49 }
 0x12e   : > { %v1374_v55 = vpop.eup %1373  ;;  %v574_v56 = vadd.f32 1.0, %v1372_v52 }
 0x12f   : > { %v778_v59 = vsel %vm777_vm5, %v1370_v42, %v774_v54  ;;  %v786_v60 = vmul.f32 %v1374_v55, %v573_v43  ;;  %vm791_vm8 = vweird.f32 %v1374_v55 }
 0x130   : > { %1375 = vrcp.f32 %v574_v56  ;;  %v783_v62 = vsel %vm780_vm7, %v782_v58, %v778_v59  ;;  %v811_v7 = vand.u32 2147483648, %v574_v56  ;;  %v809_v10 = vand.u32 2147483647, %v574_v56  ;;  %vm792_vm11 = vmor %vm790_vm9, %vm791_vm8 }
 0x131   : > { %v821_v63 = vpack.c.bf16 %v783_v62, %v768_v61  ;;  %v787_v0 = vsub.f32 1.0, %v786_v60  ;;  %vm805_vm12 = vweird.f32 %v574_v56 }
 0x132   : > { %v812_v14 = vor.u32 1.1754944e-38, %v811_v7  ;;  %vm810_vm15 = vcmp.eq.f32.partialorder %v809_v10, 8.507059e+37 }
 0x133   : > { %963 = vmatmul.bf16.gmra.mxu2 %v821_v63  ;;  %1012 = vmatmul.bf16.gmra.mxu3 %v821_v63  ;;  %v788_v1 = vmul.f32 %v1374_v55, %v787_v0 }
 0x135   : > { %v789_v4 = vadd.f32 %v1374_v55, %v788_v1 }
 0x136   : > { %v1376_v2 = vpop.eup %1375 }
 0x137   : > { %v801_v3 = vmul.f32 %v1376_v2, %v574_v56  ;;  %vm806_vm10 = vweird.f32 %v1376_v2  ;;  %v793_v11 = vsel %vm792_vm11, %v1374_v55, %v789_v4 }
 0x138   : > { %vm807_vm13 = vmor %vm805_vm12, %vm806_vm10  ;;  %v798_v16 = vsel %vm795_vm14, %v797_v13, %v793_v11 }
 0x139   : > { %v802_v5 = vsub.f32 1.0, %v801_v3 }
 0x13b   : > { %v803_v9 = vmul.f32 %v1376_v2, %v802_v5 }
 0x13d   : > { %v804_v12 = vadd.f32 %v1376_v2, %v803_v9 }
 0x13f   : > { %v808_v15 = vsel %vm807_vm13, %v1376_v2, %v804_v12 }
 0x140   : > { %v813_v17 = vsel %vm810_vm15, %v812_v14, %v808_v15 }
 0x141   : > { %v822_v18 = vpack.c.bf16 %v813_v17, %v798_v16 }
 0x143   : > { %968 = vmatmul.bf16.gmra.mxu2 %v822_v18  ;;  %1017 = vmatmul.bf16.gmra.mxu3 %v822_v18 }
 0x156   : > { %v934_v22 = vpop.f32.mrf.mxu2  ;;  %v983_v23 = vpop.f32.mrf.mxu3 }
 0x157   : > { %v935_v24 = vadd.f32 %v934_v22, %v1752_v20  ;;  %v984_v25 = vadd.f32 %v983_v23, %v1754_v21 }
 0x159   : > { %1023 = vst [vmem:[%s1761_s13] sm:$0xff] %v935_v24 }
 0x15a   : > { %1024 = vst [vmem:[%s1761_s13 + $0x8] sm:$0xff] %v984_v25 }
 0x15e   : > { %v936_v26 = vpop.f32.mrf.mxu2  ;;  %v985_v27 = vpop.f32.mrf.mxu3 }
 0x15f   : > { %v937_v28 = vadd.f32 %v936_v26, %v1752_v20  ;;  %v986_v29 = vadd.f32 %v985_v27, %v1754_v21 }
 0x161   : > { %1025 = vst [vmem:[%s1761_s13 + $0x10] sm:$0xff] %v937_v28 }
 0x162   : > { %1026 = vst [vmem:[%s1761_s13 + $0x18] sm:$0xff] %v986_v29 }
 0x166   : > { %v939_v31 = vpop.f32.mrf.mxu2  ;;  %v988_v32 = vpop.f32.mrf.mxu3 }
 0x167   : > { %v940_v33 = vadd.f32 %v939_v31, %v1752_v20  ;;  %v989_v34 = vadd.f32 %v988_v32, %v1754_v21 }
 0x169   : > { %1027 = vst [vmem:[%s1761_s13 + $0x20] sm:$0xff] %v940_v33 }
 0x16a   : > { %1028 = vst [vmem:[%s1761_s13 + $0x28] sm:$0xff] %v989_v34 }
 0x16e   : > { %v941_v35 = vpop.f32.mrf.mxu2  ;;  %v990_v36 = vpop.f32.mrf.mxu3 }
 0x16f   : > { %v942_v37 = vadd.f32 %v941_v35, %v1752_v20  ;;  %v991_v38 = vadd.f32 %v990_v36, %v1754_v21 }
 0x171   : > { %1029 = vst [vmem:[%s1761_s13 + $0x30] sm:$0xff] %v942_v37 }
 0x172   : > { %1030 = vst [vmem:[%s1761_s13 + $0x38] sm:$0xff] %v991_v38 }
 0x176   : > { %v944_v39 = vpop.f32.mrf.mxu2  ;;  %v993_v40 = vpop.f32.mrf.mxu3 }
 0x177   : > { %v945_v41 = vadd.f32 %v944_v39, %v1752_v20  ;;  %v994_v42 = vadd.f32 %v993_v40, %v1754_v21 }
 0x179   : > { %1031 = vst [vmem:[%s1761_s13 + $0x40] sm:$0xff] %v945_v41 }
 0x17a   : > { %1032 = vst [vmem:[%s1761_s13 + $0x48] sm:$0xff] %v994_v42 }
 0x17e   : > { %v946_v43 = vpop.f32.mrf.mxu2  ;;  %v995_v44 = vpop.f32.mrf.mxu3 }
 0x17f   : > { %v947_v45 = vadd.f32 %v946_v43, %v1752_v20  ;;  %v996_v46 = vadd.f32 %v995_v44, %v1754_v21 }
 0x181   : > { %1033 = vst [vmem:[%s1761_s13 + $0x50] sm:$0xff] %v947_v45 }
 0x182   : > { %1034 = vst [vmem:[%s1761_s13 + $0x58] sm:$0xff] %v996_v46 }
 0x186   : > { %v949_v30 = vpop.f32.mrf.mxu2  ;;  %v998_v47 = vpop.f32.mrf.mxu3 }
 0x187   : > { %v950_v48 = vadd.f32 %v949_v30, %v1752_v20  ;;  %v999_v49 = vadd.f32 %v998_v47, %v1754_v21 }
 0x189   : > { %1035 = vst [vmem:[%s1761_s13 + $0x60] sm:$0xff] %v950_v48 }
 0x18a   : > { %1036 = vst [vmem:[%s1761_s13 + $0x68] sm:$0xff] %v999_v49 }
 0x18e   : > { %v951_v50 = vpop.f32.mrf.mxu2  ;;  %v1000_v51 = vpop.f32.mrf.mxu3 }
 0x18f   : > { %v952_v52 = vadd.f32 %v951_v50, %v1752_v20  ;;  %v1001_v53 = vadd.f32 %v1000_v51, %v1754_v21 }
 0x191   : > { %1037 = vst [vmem:[%s1761_s13 + $0x70] sm:$0xff] %v952_v52 }
 0x192   : > { %1038 = vst [vmem:[%s1761_s13 + $0x78] sm:$0xff] %v1001_v53 }
 0x196   : > { %v954_v54 = vpop.f32.mrf.mxu2  ;;  %v1003_v55 = vpop.f32.mrf.mxu3 }
 0x197   : > { %v955_v56 = vadd.f32 %v954_v54, %v1752_v20  ;;  %v1004_v57 = vadd.f32 %v1003_v55, %v1754_v21 }
 0x199   : > { %1039 = vst [vmem:[%s1761_s13 + $0x80] sm:$0xff] %v955_v56 }
 0x19a   : > { %1040 = vst [vmem:[%s1761_s13 + $0x88] sm:$0xff] %v1004_v57 }
 0x19e   : > { %v956_v58 = vpop.f32.mrf.mxu2  ;;  %v1005_v59 = vpop.f32.mrf.mxu3 }
 0x19f   : > { %v957_v60 = vadd.f32 %v956_v58, %v1752_v20  ;;  %v1006_v61 = vadd.f32 %v1005_v59, %v1754_v21 }
 0x1a1   : > { %1041 = vst [vmem:[%s1761_s13 + $0x90] sm:$0xff] %v957_v60 }
 0x1a2   : > { %1042 = vst [vmem:[%s1761_s13 + $0x98] sm:$0xff] %v1006_v61 }
 0x1a6   : > { %v959_v62 = vpop.f32.mrf.mxu2  ;;  %v1008_v63 = vpop.f32.mrf.mxu3 }
 0x1a7   : > { %v960_v0 = vadd.f32 %v959_v62, %v1752_v20  ;;  %v1009_v1 = vadd.f32 %v1008_v63, %v1754_v21 }
 0x1a9   : > { %1043 = vst [vmem:[%s1761_s13 + $0xa0] sm:$0xff] %v960_v0 }
 0x1aa   : > { %1044 = vst [vmem:[%s1761_s13 + $0xa8] sm:$0xff] %v1009_v1 }
 0x1ae   : > { %v961_v2 = vpop.f32.mrf.mxu2  ;;  %v1010_v3 = vpop.f32.mrf.mxu3 }
 0x1af   : > { %v962_v4 = vadd.f32 %v961_v2, %v1752_v20  ;;  %v1011_v5 = vadd.f32 %v1010_v3, %v1754_v21 }
 0x1b1   : > { %1045 = vst [vmem:[%s1761_s13 + $0xb0] sm:$0xff] %v962_v4 }
 0x1b2   : > { %1046 = vst [vmem:[%s1761_s13 + $0xb8] sm:$0xff] %v1011_v5 }
 0x1b6   : > { %v964_v6 = vpop.f32.mrf.mxu2  ;;  %v1013_v7 = vpop.f32.mrf.mxu3 }
 0x1b7   : > { %v965_v8 = vadd.f32 %v964_v6, %v1752_v20  ;;  %v1014_v9 = vadd.f32 %v1013_v7, %v1754_v21 }
 0x1b9   : > { %1047 = vst [vmem:[%s1761_s13 + $0xc0] sm:$0xff] %v965_v8 }
 0x1ba   : > { %1048 = vst [vmem:[%s1761_s13 + $0xc8] sm:$0xff] %v1014_v9 }
 0x1be   : > { %v966_v10 = vpop.f32.mrf.mxu2  ;;  %v1015_v11 = vpop.f32.mrf.mxu3 }
 0x1bf   : > { %v967_v12 = vadd.f32 %v966_v10, %v1752_v20  ;;  %v1016_v13 = vadd.f32 %v1015_v11, %v1754_v21 }
 0x1c1   : > { %1049 = vst [vmem:[%s1761_s13 + $0xd0] sm:$0xff] %v967_v12 }
 0x1c2   : > { %1050 = vst [vmem:[%s1761_s13 + $0xd8] sm:$0xff] %v1016_v13 }
 0x1c6   : > { %v969_v14 = vpop.f32.mrf.mxu2  ;;  %v1018_v15 = vpop.f32.mrf.mxu3 }
 0x1c7   : > { %v970_v16 = vadd.f32 %v969_v14, %v1752_v20  ;;  %v1019_v17 = vadd.f32 %v1018_v15, %v1754_v21 }
 0x1c9   : > { %1051 = vst [vmem:[%s1761_s13 + $0xe0] sm:$0xff] %v970_v16 }
 0x1ca   : > { %1052 = vst [vmem:[%s1761_s13 + $0xe8] sm:$0xff] %v1019_v17 }
 0x1ce   : > { %v971_v18 = vpop.f32.mrf.mxu2  ;;  %v1020_v19 = vpop.f32.mrf.mxu3 }
 0x1cf   : > { %v972_v22 = vadd.f32 %v971_v18, %v1752_v20  ;;  %v1021_v23 = vadd.f32 %v1020_v19, %v1754_v21 }
 0x1d1   : > { %1053 = vst [vmem:[%s1761_s13 + $0xf0] sm:$0xff] %v972_v22 }
 0x1d2   : > { %1054 = vst [vmem:[%s1761_s13 + $0xf8] sm:$0xff] %v1021_v23 }
 0x1d3 PF: > { %s15_s18 = sadd.s32 1, %s1383_s18  }
 0x1d4   : > { %p12_p4 = scmp.ge.s32.totalorder %s15_s18, 5  }
 0x1d6   :  { %14 = sbr.rel (!%p12_p4) target bundleno = 1 (0x1), region = 70 }

</bundles_post_ra>
